<compile_context>
chip_gen: v7x
topology: tpu7x:2x2x1
jax: 0.10.0
libtpu: 0.0.40
codegen_flags: <defaults>
</compile_context>

<pallas_src>
from typing import NamedTuple

import jax
import jax.numpy as jnp
from jax.experimental import pallas as pl
from jax.experimental.pallas import tpu as pltpu


def _round_up(x: int, m: int) -> int:
    return ((x + m - 1) // m) * m


class LoRAParams(NamedTuple):
    wt: jax.Array        # (K_pad, N_pad)  frozen weight, pre-transposed, compute dtype
    bias: jax.Array      # (1, N_pad)      f32
    lora_A: jax.Array    # (K_pad, R_pad)  compute dtype
    lora_Bs: jax.Array   # (R_pad, N_pad)  compute dtype, scaling folded in
    in_features: int
    out_features: int
    tile_n: int
    tile_k: int


def prepare_lora_params(weight, bias, lora_A, lora_B, *, alpha: float, rank: int,
                        tile_n: int = 512, tile_k: int = 1024,
                        compute_dtype=jnp.bfloat16) -> LoRAParams:
    """One-time setup: transpose / cast / pad / fold scaling (NOT per forward)."""
    out_features, in_features = weight.shape          # PyTorch layout (out, in)
    assert tile_n % 128 == 0 and tile_k % 128 == 0

    # Clamp tiles to the (256-aligned) padded dims: full MXU width on v6e/v7x.
    tn = min(tile_n, _round_up(out_features, 256))
    tk = min(tile_k, _round_up(in_features, 256))
    n_pad = _round_up(out_features, tn)
    k_pad = _round_up(in_features, tk)
    r_pad = _round_up(rank, 128)                       # full lane tile for LoRA rank
    scaling = alpha / rank

    wt = jnp.pad(weight.T.astype(compute_dtype),
                 ((0, k_pad - in_features), (0, n_pad - out_features)))
    if bias is None:
        b2 = jnp.zeros((1, n_pad), jnp.float32)
    else:
        b2 = jnp.pad(bias.astype(jnp.float32).reshape(1, -1),
                     ((0, 0), (0, n_pad - out_features)))
    a = jnp.pad(lora_A.astype(compute_dtype),
                ((0, k_pad - in_features), (0, r_pad - rank)))
    bs = jnp.pad((lora_B * scaling).astype(compute_dtype),
                 ((0, r_pad - rank), (0, n_pad - out_features)))
    return LoRAParams(wt, b2, a, bs, in_features, out_features, tn, tk)


def _xa_kernel(x_ref, a_ref, o_ref, acc_ref):
    """Pass 1: xa = x @ A for one M-tile, reduced over K."""
    k = pl.program_id(1)

    @pl.when(k == 0)
    def _init():
        acc_ref[...] = jnp.zeros_like(acc_ref)

    acc_ref[...] += jnp.dot(x_ref[...], a_ref[...],
                            preferred_element_type=jnp.float32)      # (tm, R_pad)

    @pl.when(k == pl.num_programs(1) - 1)
    def _finalize():
        o_ref[...] = acc_ref[...].astype(o_ref.dtype)


def _lora_kernel(x_ref, wt_ref, b_ref, xa_ref, bb_ref, o_ref, acc_ref):
    """Pass 2: base linear (+ bias) + xa @ B_scaled for one (M, N) tile, reduced over K."""
    k = pl.program_id(2)

    @pl.when(k == 0)
    def _init():
        # Start the accumulator from the broadcast bias (no epilogue add needed).
        acc_ref[...] = jnp.broadcast_to(b_ref[...], acc_ref.shape)

    acc_ref[...] += jnp.dot(x_ref[...], wt_ref[...],
                            preferred_element_type=jnp.float32)      # (tm, tn)

    @pl.when(k == pl.num_programs(2) - 1)
    def _finalize():
        lora = jnp.dot(xa_ref[...], bb_ref[...],
                       preferred_element_type=jnp.float32)           # (tm, tn)
        o_ref[...] = (acc_ref[...] + lora).astype(o_ref.dtype)


def lora_forward(x, params: LoRAParams, *, tile_m: int = 512, out_dtype=None):
    """x: (M, in_features). Returns (M, out_features)."""
    M, in_features = x.shape
    assert in_features == params.in_features
    assert tile_m % 8 == 0

    cdt = params.wt.dtype
    itemsize = jnp.dtype(cdt).itemsize
    row_mult = max(8, 32 // itemsize)        # 8 rows f32, 16 rows bf16 (sublane packing)
    k_pad, n_pad = params.wt.shape
    r_pad = params.lora_A.shape[1]
    tn, tk = params.tile_n, params.tile_k
    tm = _round_up(min(tile_m, _round_up(M, row_mult)), row_mult)
    m_pad = _round_up(M, tm)
    out_dtype = out_dtype or cdt            # default: compute dtype (bf16 in production)

    xc = x.astype(cdt)
    if m_pad != M or k_pad != in_features:
        xc = jnp.pad(xc, ((0, m_pad - M), (0, k_pad - in_features)))

    n_m, n_n, n_k = m_pad // tm, n_pad // tn, k_pad // tk

    # ---------- Pass 1: xa = x @ A (tiny, computed once per M-tile) ----------
    xa = pl.pallas_call(
        _xa_kernel,
        out_shape=jax.ShapeDtypeStruct((m_pad, r_pad), cdt),
        grid_spec=pltpu.PrefetchScalarGridSpec(
            num_scalar_prefetch=0,
            grid=(n_m, n_k),
            in_specs=[
                pl.BlockSpec((tm, tk), lambda i, k: (i, k)),          # x
                pl.BlockSpec((tk, r_pad), lambda i, k: (k, 0)),       # lora_A
            ],
            out_specs=pl.BlockSpec((tm, r_pad), lambda i, k: (i, 0)),
            scratch_shapes=[pltpu.VMEM((tm, r_pad), jnp.float32)],
        ),
        compiler_params=pltpu.CompilerParams(
            dimension_semantics=("parallel", "arbitrary")),
        cost_estimate=pl.CostEstimate(
            flops=2 * m_pad * k_pad * r_pad,
            transcendentals=0,
            bytes_accessed=(xc.size * itemsize
                            + params.lora_A.size * itemsize
                            + m_pad * r_pad * itemsize)),
    )(xc, params.lora_A)

    # ---------- Pass 2: fused base GEMM + bias + LoRA finalize ----------
    # Deepen W^T prefetch when the W^T HBM stream dominates (decode / small-M).
    wt_spec_kwargs = {}
    if n_m <= 2:
        wt_spec_kwargs["pipeline_mode"] = pl.Buffered(3)
    wt_spec = pl.BlockSpec((tk, tn), lambda i, j, k: (k, j), **wt_spec_kwargs)

    flops = 2 * m_pad * k_pad * n_pad + 2 * m_pad * r_pad * n_pad
    out_itemsize = jnp.dtype(out_dtype).itemsize
    bytes_accessed = (xc.size * itemsize * n_n                 # x re-read per N-tile
                      + params.wt.size * itemsize * n_m        # W^T re-read per M-tile
                      + params.bias.size * 4 * n_m             # bias per M-tile (tiny)
                      + m_pad * r_pad * itemsize               # xa once per M-tile
                      + params.lora_Bs.size * itemsize * n_m   # B_scaled per M-tile
                      + m_pad * n_pad * out_itemsize)          # output writeback

    out = pl.pallas_call(
        _lora_kernel,
        out_shape=jax.ShapeDtypeStruct((m_pad, n_pad), out_dtype),
        grid_spec=pltpu.PrefetchScalarGridSpec(
            num_scalar_prefetch=0,
            grid=(n_m, n_n, n_k),
            in_specs=[
                pl.BlockSpec((tm, tk), lambda i, j, k: (i, k)),       # x
                wt_spec,                                              # W^T
                pl.BlockSpec((1, tn), lambda i, j, k: (0, j)),        # bias
                pl.BlockSpec((tm, r_pad), lambda i, j, k: (i, 0)),    # xa (per M-tile)
                pl.BlockSpec((r_pad, tn), lambda i, j, k: (0, j)),    # lora_B * scale
            ],
            out_specs=pl.BlockSpec((tm, tn), lambda i, j, k: (i, j)),
            scratch_shapes=[pltpu.VMEM((tm, tn), jnp.float32)],       # f32 accumulator
        ),
        compiler_params=pltpu.CompilerParams(
            dimension_semantics=("parallel", "parallel", "arbitrary")),
        cost_estimate=pl.CostEstimate(flops=flops, transcendentals=0,
                                      bytes_accessed=bytes_accessed),
    )(xc, params.wt, params.bias, xa, params.lora_Bs)

    return out[:M, :params.out_features]


if __name__ == "__main__":
    key = jax.random.PRNGKey(0)

    # ---- Test 1: small shapes from the module, f32 compute, tight check ----
    batch, in_features, out_features, rank, alpha = 8, 32, 32, 8, 1.0
    kx, kw, kb, ka, kbb = jax.random.split(key, 5)
    x = jax.random.normal(kx, (batch, in_features), jnp.float32)
    weight = jax.random.normal(kw, (out_features, in_features), jnp.float32) * 0.1
    bias = jax.random.normal(kb, (out_features,), jnp.float32) * 0.1
    bound = (6.0 / rank) ** 0.5 / (1.0 + 5.0) ** 0.5
    lora_A = jax.random.uniform(ka, (in_features, rank), jnp.float32,
                                minval=-bound, maxval=bound)
    lora_B = jax.random.normal(kbb, (rank, out_features), jnp.float32) * 0.05

    params = prepare_lora_params(weight, bias, lora_A, lora_B, alpha=alpha,
                                 rank=rank, compute_dtype=jnp.float32)
    out = jax.block_until_ready(lora_forward(x, params))
    ref = (x @ weight.T + bias) + (x @ lora_A @ lora_B) * (alpha / rank)
    assert out.shape == (batch, out_features)
    assert out.dtype == jnp.float32
    assert jnp.allclose(out, ref, atol=1e-4, rtol=1e-4), "f32 mismatch vs reference"

    # ---- Test 2: bf16 production path, multi-tile grid (M/N/K all tiled) ----
    M2, K2, N2, rank2, alpha2 = 40, 160, 192, 8, 16.0
    k1, k2, k3, k4, k5 = jax.random.split(jax.random.PRNGKey(1), 5)
    x2 = jax.random.normal(k1, (M2, K2), jnp.float32)
    w2 = jax.random.normal(k2, (N2, K2), jnp.float32) * 0.1
    b2 = jax.random.normal(k3, (N2,), jnp.float32) * 0.1
    a2 = jax.random.uniform(k4, (K2, rank2), jnp.float32, minval=-0.3, maxval=0.3)
    bb2 = jax.random.normal(k5, (rank2, N2), jnp.float32) * 0.05

    params2 = prepare_lora_params(w2, b2, a2, bb2, alpha=alpha2, rank=rank2,
                                  tile_n=128, tile_k=128,
                                  compute_dtype=jnp.bfloat16)
    out2 = jax.block_until_ready(lora_forward(x2, params2, tile_m=16))

    # Reference with the same bf16 input rounding, f32 math.
    f32 = lambda a: a.astype(jnp.bfloat16).astype(jnp.float32)
    ref2 = (f32(x2) @ f32(w2).T + b2
            + f32(x2) @ f32(a2) @ f32(bb2 * (alpha2 / rank2)))
    assert out2.shape == (M2, N2)
    assert out2.dtype == jnp.bfloat16          # production default: compute dtype out
    assert jnp.allclose(out2.astype(jnp.float32), ref2, atol=5e-2, rtol=5e-2), \
        "bf16 mismatch vs reference"

    print("KERNEL_OK")
</pallas_src>

<mosaic_0001>
module attributes {stable_mosaic.version = 11 : i64} {
  func.func @_xa_kernel(%arg0: i32, %arg1: i32, %arg2: memref<8x256xf32, #tpu.memory_space<vmem>>, %arg3: memref<256x128xf32, #tpu.memory_space<vmem>>, %arg4: memref<8x128xf32, #tpu.memory_space<vmem>>, %arg5: memref<8x128xf32, #tpu.memory_space<vmem>>) attributes {dimension_semantics = [#tpu.dimension_semantics<parallel>, #tpu.dimension_semantics<arbitrary>], iteration_bounds = array<i64: 1, 1>, scalar_prefetch = 0 : i64, scratch_operands = 1 : i64, tpu.core_type = #tpu.core_type<tc>, window_params = [{transform_indices = @transform_0, window_bounds = array<i64: 8, 256>}, {transform_indices = @transform_1, window_bounds = array<i64: 256, 128>}, {transform_indices = @transform_2, window_bounds = array<i64: 8, 128>}]} {
    %c0_i32 = arith.constant 0 : i32
    %0 = arith.cmpi eq, %arg1, %c0_i32 : i32
    %1 = arith.extui %0 : i1 to i32
    %c0_i32_0 = arith.constant 0 : i32
    %2 = arith.cmpi ne, %1, %c0_i32_0 : i32
    scf.if %2 {
      %cst_10 = arith.constant 0.000000e+00 : f32
      %12 = vector.broadcast %cst_10 : f32 to vector<8x128xf32>
      %c0_11 = arith.constant 0 : index
      %c0_12 = arith.constant 0 : index
      %13 = vector.load %arg5[%c0_11, %c0_12] : memref<8x128xf32, #tpu.memory_space<vmem>>, vector<8x128xf32>
      tpu.vector_store %arg5[%c0_11, %c0_12], %12 {strides = array<i32>} : memref<8x128xf32, #tpu.memory_space<vmem>>, vector<8x128xf32>,
    } else {
    }
    %c0 = arith.constant 0 : index
    %c0_1 = arith.constant 0 : index
    %3 = vector.load %arg5[%c0, %c0_1] : memref<8x128xf32, #tpu.memory_space<vmem>>, vector<8x128xf32>
    %c0_2 = arith.constant 0 : index
    %c0_3 = arith.constant 0 : index
    %4 = vector.load %arg2[%c0_2, %c0_3] : memref<8x256xf32, #tpu.memory_space<vmem>>, vector<8x256xf32>
    %c0_4 = arith.constant 0 : index
    %c0_5 = arith.constant 0 : index
    %5 = vector.load %arg3[%c0_4, %c0_5] : memref<256x128xf32, #tpu.memory_space<vmem>>, vector<256x128xf32>
    %cst = arith.constant dense<0.000000e+00> : vector<8x128xf32>
    %6 = tpu.matmul %4, %5, %cst {dimension_numbers = #tpu.dot_dimension_numbers<[1], [0], [0], [1], [0, 0, 1, 1], [], []>} : vector<8x256xf32>, vector<256x128xf32>, vector<8x128xf32> -> vector<8x128xf32>
    %7 = arith.addf %3, %6 : vector<8x128xf32>
    %c0_6 = arith.constant 0 : index
    %c0_7 = arith.constant 0 : index
    %8 = vector.load %arg5[%c0_6, %c0_7] : memref<8x128xf32, #tpu.memory_space<vmem>>, vector<8x128xf32>
    tpu.vector_store %arg5[%c0_6, %c0_7], %7 {strides = array<i32>} : memref<8x128xf32, #tpu.memory_space<vmem>>, vector<8x128xf32>,
    %c0_i32_8 = arith.constant 0 : i32
    %9 = arith.cmpi eq, %arg1, %c0_i32_8 : i32
    %10 = arith.extui %9 : i1 to i32
    %c0_i32_9 = arith.constant 0 : i32
    %11 = arith.cmpi ne, %10, %c0_i32_9 : i32
    scf.if %11 {
      %c0_10 = arith.constant 0 : index
      %c0_11 = arith.constant 0 : index
      %12 = vector.load %arg5[%c0_10, %c0_11] : memref<8x128xf32, #tpu.memory_space<vmem>>, vector<8x128xf32>
      %c0_12 = arith.constant 0 : index
      %c0_13 = arith.constant 0 : index
      %13 = vector.load %arg4[%c0_12, %c0_13] : memref<8x128xf32, #tpu.memory_space<vmem>>, vector<8x128xf32>
      tpu.vector_store %arg4[%c0_12, %c0_13], %12 {strides = array<i32>} : memref<8x128xf32, #tpu.memory_space<vmem>>, vector<8x128xf32>,
    } else {
    }
    return
  }
  func.func @transform_0(%arg0: i32, %arg1: i32) -> (i32, i32) {
    %c0_i32 = arith.constant 0 : i32
    return %arg0, %arg1 : i32, i32
  }
  func.func @transform_1(%arg0: i32, %arg1: i32) -> (i32, i32) {
    %c0_i32 = arith.constant 0 : i32
    %c0_i32_0 = arith.constant 0 : i32
    return %arg1, %c0_i32 : i32, i32
  }
  func.func @transform_2(%arg0: i32, %arg1: i32) -> (i32, i32) {
    %c0_i32 = arith.constant 0 : i32
    %c0_i32_0 = arith.constant 0 : i32
    return %arg0, %c0_i32 : i32, i32
  }
}

</mosaic_0001>

<bundles_post_ra>
// kernel: tpu_custom_call.1
= control target key start
LH: loop header
LB: loop body
LE: loop exit
PB: predicated region body
PF: predicated region fallthrough
CT: control target
= control target key end

     0   :  { %7 = vsyncpa [#allocation4], 0  ;;  %s378_s0 = inlined_call_operand.hbm [shape: f32[8,256], index: 0, kind: input, shape index: {}]   ;;  %s379_s1 = inlined_call_operand.hbm [shape: f32[256,128], index: 1, kind: input, shape index: {}]   ;;  %s380_s2 = inlined_call_operand.hbm [shape: f32[8,128], index: 2, kind: output, shape index: {}]  }
   0x1   :  { %8 = vsyncpa [#allocation7], 0 }
   0x2   :  { %9 = vsyncpa [#allocation5], 0  ;;  %s315_s9 = smov [#allocation3]   ;;  %s316_s11 = smov [#allocation6]  }
   0x3   :  { %s16_s10 = sshll.u32 %s315_s9, 4  ;;  %s25_s12 = sshll.u32 %s316_s11, 4  ;;  %s17_s10 = int_to_ptr.vmem [resolvable:$true] %s16_s10  ;;  %s335_s12 = int_to_ptr.vmem [resolvable:$true] %s25_s12 }
   0x4   :  { %s243_s15 = scalar_lea.hbm %s378_s0, 256 }
   0x5   :  { %p244_p0 = scmp.ne.s32.totalorder %s378_s0, %s243_s15  ;;  %p247_p1 = scmp.lt.u32.totalorder %s243_s15, %s378_s0 }
   0x7   :  { %p249_p2 = pnand %p247_p1, %p244_p0 }
   0x9   :  { %252 = shalt.err (!%p249_p2)
}
   0xa   :  { %s253_s20 = scalar_lea.vmem %s17_s10, 256  ;;  %p258_p4 = scmp.lt.s32.totalorder %s17_s10, %s17_s10 }
   0xb   :  { %p254_p3 = scmp.ne.s32.totalorder %s17_s10, %s253_s20  ;;  %p259_p5 = scmp.lt.s32.totalorder %s253_s20, %s253_s20 }
   0xd   :  { %p260_p6 = por %p259_p5, %p258_p4 }
   0xf   :  { %p261_p7 = pnand %p260_p6, %p254_p3 }
  0x11   :  { %264 = shalt.err (!%p261_p7)
}
  0x12   :  { %19 = dma.hbm_to_vmem [thread:$0]  %s378_s0, 256, %s17_s10, [#allocation4]  }
  0x13   :  { %s265_s25 = scalar_lea.hbm %s379_s1, 4096 }
  0x14   :  { %p266_p8 = scmp.ne.s32.totalorder %s379_s1, %s265_s25  ;;  %p269_p9 = scmp.lt.u32.totalorder %s265_s25, %s379_s1 }
  0x16   :  { %p271_p10 = pnand %p269_p9, %p266_p8 }
  0x18   :  { %274 = shalt.err (!%p271_p10)
}
  0x19   :  { %s275_s30 = scalar_lea.vmem %s335_s12, 4096  ;;  %p280_p12 = scmp.lt.s32.totalorder %s335_s12, %s335_s12 }
  0x1a   :  { %p276_p11 = scmp.ne.s32.totalorder %s335_s12, %s275_s30  ;;  %p281_p13 = scmp.lt.s32.totalorder %s275_s30, %s275_s30 }
  0x1c   :  { %p282_p0 = por %p281_p13, %p280_p12 }
  0x1e   :  { %p283_p1 = pnand %p282_p0, %p276_p11 }
  0x20   :  { %286 = shalt.err (!%p283_p1)
}
  0x21   :  { %s317_s0 = smov 128   ;;  %s318_s3 = smov 8  }
  0x22   :  { %31 = dma.hbm_to_vmem [thread:$0]  %s379_s1, 4096, %s335_s12, [#allocation7], %s317_s0, %s317_s0, %s318_s3  }
  0x23   :  { %309 = dma.done.wait [#allocation4], 256  }
  0x24   :  { %310 = vsyncadd [#allocation4], 4294967040 }
  0x25   :  { %311 = dma.done.wait [#allocation7], 4096  }
  0x26   :  { %312 = vsyncadd [#allocation7], 4294963200  ;;  %v62_v0 = vld [vmem:[#allocation6 + $0x80] sm:$0xff]  ;;  %v63_v1 = vld [vmem:[#allocation6 + $0x88] sm:$0xff]  ;;  %s319_s1 = smov [#allocation8]  }
  0x27   :  { %v46_v2 = vld [vmem:[#allocation6] sm:$0xff]  ;;  %v206_v3 = vpack.c.bf16 %v63_v1, %v62_v0  ;;  %v47_v4 = vld [vmem:[#allocation6 + $0x8] sm:$0xff]  ;;  %v64_v5 = vld [vmem:[#allocation6 + $0x90] sm:$0xff]  ;;  %s161_s6 = sshll.u32 %s319_s1, 4  ;;  %s162_s6 = int_to_ptr.vmem [resolvable:$true] %s161_s6 }
  0x28   :  { %v65_v6 = vld [vmem:[#allocation6 + $0x98] sm:$0xff]  ;;  %v208_v7 = vpack.c.bf16 %v47_v4, %v46_v2  ;;  %v48_v9 = vld [vmem:[#allocation6 + $0x10] sm:$0xff]  ;;  %v66_v11 = vld [vmem:[#allocation6 + $0xa0] sm:$0xff]  ;;  %s287_s7 = scalar_lea.vmem %s162_s6, 128  ;;  %p292_p3 = scmp.lt.s32.totalorder %s162_s6, %s162_s6 }
  0x29   :  { %v210_v8 = vpack.c.bf16 %v65_v6, %v64_v5  ;;  %v49_v10 = vld [vmem:[#allocation6 + $0x18] sm:$0xff]  ;;  %207 = vmatprep.subr.bf16.mxu0 %v206_v3  ;;  %v67_v12 = vld [vmem:[#allocation6 + $0xa8] sm:$0xff]  ;;  %v50_v15 = vld [vmem:[#allocation6 + $0x20] sm:$0xff]  ;;  %p288_p2 = scmp.ne.s32.totalorder %s162_s6, %s287_s7  ;;  %p293_p4 = scmp.lt.s32.totalorder %s287_s7, %s287_s7 }
  0x2a   :  { %209 = vmatpush3.bf16.msra.mxu0 %v208_v7  ;;  %v212_v13 = vpack.c.bf16 %v49_v10, %v48_v9  ;;  %v214_v14 = vpack.c.bf16 %v67_v12, %v66_v11  ;;  %v51_v16 = vld [vmem:[#allocation6 + $0x28] sm:$0xff]  ;;  %v68_v17 = vld [vmem:[#allocation6 + $0xb0] sm:$0xff]  ;;  %v69_v18 = vld [vmem:[#allocation6 + $0xb8] sm:$0xff] }
  0x2b   :  { %211 = vmatprep.subr.bf16.mxu0 %v210_v8  ;;  %v216_v19 = vpack.c.bf16 %v51_v16, %v50_v15  ;;  %v218_v20 = vpack.c.bf16 %v69_v18, %v68_v17  ;;  %v52_v21 = vld [vmem:[#allocation6 + $0x30] sm:$0xff]  ;;  %v53_v22 = vld [vmem:[#allocation6 + $0x38] sm:$0xff]  ;;  %v70_v23 = vld [vmem:[#allocation6 + $0xc0] sm:$0xff]  ;;  %p294_p5 = por %p293_p4, %p292_p3 }
  0x2c   :  { %v71_v24 = vld [vmem:[#allocation6 + $0xc8] sm:$0xff]  ;;  %v45_v25 = vld [vmem:[#allocation3 + $0x8] sm:$0xff]  ;;  %v220_v26 = vpack.c.bf16 %v53_v22, %v52_v21  ;;  %v54_v28 = vld [vmem:[#allocation6 + $0x40] sm:$0xff] }
  0x2d   :  { %142 = vmatprep.mubr.f32.mxu0 %v45_v25  ;;  %v222_v27 = vpack.c.bf16 %v71_v24, %v70_v23  ;;  %v55_v29 = vld [vmem:[#allocation6 + $0x48] sm:$0xff]  ;;  %v72_v30 = vld [vmem:[#allocation6 + $0xd0] sm:$0xff]  ;;  %v73_v31 = vld [vmem:[#allocation6 + $0xd8] sm:$0xff]  ;;  %p295_p6 = pnand %p294_p5, %p288_p2 }
  0x2e   :  { %213 = vmatpush3.bf16.msra.mxu0 %v212_v13  ;;  %v224_v32 = vpack.c.bf16 %v55_v29, %v54_v28  ;;  %v226_v33 = vpack.c.bf16 %v73_v31, %v72_v30  ;;  %v56_v34 = vld [vmem:[#allocation6 + $0x50] sm:$0xff]  ;;  %v57_v35 = vld [vmem:[#allocation6 + $0x58] sm:$0xff]  ;;  %v74_v36 = vld [vmem:[#allocation6 + $0xe0] sm:$0xff] }
  0x2f   :  { %215 = vmatprep.subr.bf16.mxu0 %v214_v14  ;;  %v75_v37 = vld [vmem:[#allocation6 + $0xe8] sm:$0xff]  ;;  %v228_v38 = vpack.c.bf16 %v57_v35, %v56_v34  ;;  %v58_v40 = vld [vmem:[#allocation6 + $0x60] sm:$0xff]  ;;  %v76_v42 = vld [vmem:[#allocation6 + $0xf0] sm:$0xff] }
  0x30   :  { %v230_v39 = vpack.c.bf16 %v75_v37, %v74_v36  ;;  %v59_v41 = vld [vmem:[#allocation6 + $0x68] sm:$0xff]  ;;  %v77_v43 = vld [vmem:[#allocation6 + $0xf8] sm:$0xff]  ;;  %v60_v46 = vld [vmem:[#allocation6 + $0x70] sm:$0xff] }
  0x31   :  { %v232_v44 = vpack.c.bf16 %v59_v41, %v58_v40  ;;  %v234_v45 = vpack.c.bf16 %v77_v43, %v76_v42  ;;  %v61_v47 = vld [vmem:[#allocation6 + $0x78] sm:$0xff]  ;;  %v44_v49 = vld [vmem:[#allocation3] sm:$0xff] }
  0x32   :  { %217 = vmatpush3.bf16.msra.mxu0 %v216_v19  ;;  %v236_v48 = vpack.c.bf16 %v61_v47, %v60_v46 }
  0x33   :  { %219 = vmatprep.subr.bf16.mxu0 %v218_v20 }
  0x36   :  { %221 = vmatpush3.bf16.msra.mxu0 %v220_v26 }
  0x37   :  { %223 = vmatprep.subr.bf16.mxu0 %v222_v27 }
  0x3a   :  { %225 = vmatpush3.bf16.msra.mxu0 %v224_v32 }
  0x3b   :  { %227 = vmatprep.subr.bf16.mxu0 %v226_v33 }
  0x3e   :  { %229 = vmatpush3.bf16.msra.mxu0 %v228_v38 }
  0x3f   :  { %231 = vmatprep.subr.bf16.mxu0 %v230_v39 }
  0x42   :  { %233 = vmatpush3.bf16.msra.mxu0 %v232_v44 }
  0x43   :  { %235 = vmatprep.subr.bf16.mxu0 %v234_v45 }
  0x46   :  { %237 = vmatpush3.bf16.msra.mxu0 %v236_v48 }
  0x49   :  { %143 = vmatmul.mubr.f32.vlgmr.msra.gmra.mrb[0].mxu0 %v44_v49 }
 0x11c   :  { %v203_v50 = vpop.f32.mrb[0].mxu0 }
 0x11d   :  { %v204_v51 = vpop.f32.mrb[1].mxu0 }
 0x11e   :  { %v205_v52 = vadd.f32 %v204_v51, %v203_v50 }
 0x120   :  { %154 = vst [vmem:[#allocation8] sm:$0xff] %v205_v52 }
 0x121   :  { %298 = shalt.err (!%p295_p6)
}
 0x122   :  { %s299_s10 = scalar_lea.hbm %s380_s2, 128 }
 0x123   :  { %p300_p7 = scmp.ne.s32.totalorder %s380_s2, %s299_s10  ;;  %p303_p8 = scmp.lt.u32.totalorder %s299_s10, %s380_s2 }
 0x125   :  { %p305_p9 = pnand %p303_p8, %p300_p7 }
 0x127   :  { %308 = shalt.err (!%p305_p9)
}
 0x128   :  { %164 = dma.vmem_to_hbm [thread:$0]  %s162_s6, 128, %s380_s2, [#allocation5]  }
 0x129   :  { %313 = dma.done.wait [#allocation5], 128  }
 0x12a   :  { %314 = vsyncadd [#allocation5], 4294967168 }
 0x12b   :  { %168 = vsyncpa [#allocation4], 1 }
 0x12c   :  { %169 = vsyncpa [#allocation7], 1 }
 0x12d   :  { %170 = vsyncpa [#allocation5], 1 }

</bundles_post_ra>
